<compile_context>
chip_gen: v7x
topology: tpu7x:2x2x1
jax: 0.10.0
libtpu: 0.0.40
codegen_flags: <defaults>
</compile_context>

<pallas_src>
import functools
import math

import jax
import jax.numpy as jnp
from jax import lax
from jax.experimental import pallas as pl
from jax.experimental.pallas import tpu as pltpu


def _decode_kernel(pred_ref, out_ref, *, num_anchors, bbox_attrs, anchors_wh,
                   stride_w, stride_h, feat_w, hw_tile, log2_w):
    """Decode one (A*attrs, hw_tile) lane-dense slab of one batch element."""
    rows, hw = pred_ref.shape          # rows == num_anchors * bbox_attrs
    t = pl.program_id(1)               # which hw tile of the feature map

    # ---- per-step constants (tiny iotas, broadcast lazily into slab ops) ----
    # lane-derived: absolute spatial index -> pre-scaled grid offsets, (1, hw)
    lane = lax.broadcasted_iota(jnp.int32, (1, hw), 1) + t * hw_tile
    if log2_w is not None:             # W power of two: cheap bit ops
        col = lane & (feat_w - 1)
        ln = lane >> log2_w
    else:
        col = lane % feat_w
        ln = lane // feat_w
    gx = col.astype(jnp.float32) * stride_w    # grid_x * stride_w
    gy = ln.astype(jnp.float32) * stride_h     # grid_y * stride_h

    # row-derived: which attribute each sublane row holds, (rows, 1)
    attr_id = lax.broadcasted_iota(jnp.int32, (rows, 1), 0) % bbox_attrs
    is_x = attr_id == 0
    is_y = attr_id == 1
    row_mul = jnp.where(is_x, stride_w, jnp.where(is_y, stride_h, 1.0))  # (rows,1)
    row_add = jnp.where(is_x, gx, jnp.where(is_y, gy, 0.0))              # (rows,hw)

    # ---- full-slab sigmoid (one EUP op / element) + affine, one big store ---
    sig = 0.5 * jnp.tanh(0.5 * pred_ref[...]) + 0.5
    out_ref[...] = (sig * row_mul + row_add).astype(out_ref.dtype)

    # ---- w/h rows: exp restricted to 2 rows per anchor, overwrite in place --
    row2 = lax.broadcasted_iota(jnp.int32, (2, 1), 0)
    for a in range(num_anchors):       # A is tiny & static -> unrolled
        aw, ah = anchors_wh[a]         # anchor size in image pixels
        wh_scale = jnp.where(row2 == 0, aw, ah).astype(jnp.float32)   # (2, 1)
        b = a * bbox_attrs
        out_ref[b + 2:b + 4, :] = (
            jnp.exp(pred_ref[b + 2:b + 4, :]) * wh_scale).astype(out_ref.dtype)


def _choose_hw_tile(hw, rows, out_itemsize, target_bytes=2 << 20):
    """Largest multiple-of-128 divisor of hw with ~target in+out block bytes."""
    if hw % 128 != 0:
        return hw                      # (8,128) rule: must use the full extent
    per_lane = rows * (4 + out_itemsize)       # f32 input + output, per lane
    cap = max(128, (target_bytes // per_lane) // 128 * 128)
    if hw <= cap:
        return hw
    best = 128
    for cand in range(128, cap + 1, 128):
        if hw % cand == 0:
            best = cand
    return best


def decode_box_lanedense(inp, anchors, num_classes, img_size,
                         out_dtype=jnp.float32):
    """Decoded predictions in lane-dense (B, A*(5+C), H*W) layout (fast path)."""
    B, C, H, W = inp.shape
    A = len(anchors)
    attrs = 5 + num_classes
    assert C == A * attrs, (C, A, attrs)
    HW = H * W
    rows = A * attrs

    stride_h = float(img_size[1]) / H
    stride_w = float(img_size[0]) / W
    anchors_wh = tuple((float(aw), float(ah)) for aw, ah in anchors)
    log2_w = int(math.log2(W)) if (W & (W - 1)) == 0 else None

    # Free metadata reshape: channels already factor as A*attrs and H, W are
    # the innermost contiguous dims.
    pred = inp.reshape(B, rows, HW).astype(jnp.float32)

    hw_tile = _choose_hw_tile(HW, rows, jnp.dtype(out_dtype).itemsize)
    n_hw = HW // hw_tile

    kernel = functools.partial(
        _decode_kernel,
        num_anchors=A, bbox_attrs=attrs, anchors_wh=anchors_wh,
        stride_w=stride_w, stride_h=stride_h, feat_w=W,
        hw_tile=hw_tile, log2_w=log2_w)

    return pl.pallas_call(
        kernel,
        out_shape=jax.ShapeDtypeStruct((B, rows, HW), out_dtype),
        grid_spec=pltpu.PrefetchScalarGridSpec(
            num_scalar_prefetch=0,
            grid=(B, n_hw),
            in_specs=[pl.BlockSpec((None, rows, hw_tile),
                                   lambda b, t: (b, 0, t))],
            out_specs=pl.BlockSpec((None, rows, hw_tile),
                                   lambda b, t: (b, 0, t)),
        ),
        compiler_params=pltpu.CompilerParams(
            dimension_semantics=("parallel", "parallel")),
    )(pred)


def decode_box(inp, anchors, num_classes, img_size):
    """Torch-compatible DecodeBox.forward: returns (B, A*H*W, 5+num_classes)."""
    B, C, H, W = inp.shape
    A = len(anchors)
    attrs = 5 + num_classes
    out = decode_box_lanedense(inp, anchors, num_classes, img_size)
    # Layout glue only (one extra HBM pass).  Downstream consumers should take
    # the lane-dense layout from decode_box_lanedense() directly, or fold this
    # permute into the consuming kernel (NMS / confidence filter) when
    # attrs >= ~64; kept here to preserve the torch output contract.
    return (out.reshape(B, A, attrs, H * W)
               .transpose(0, 1, 3, 2)
               .reshape(B, A * H * W, attrs))


def decode_box_ref(inp, anchors, num_classes, img_size):
    """Pure-JAX reference replicating the torch code (for verification)."""
    B, C, H, W = inp.shape
    A = len(anchors)
    attrs = 5 + num_classes
    stride_h = img_size[1] / H
    stride_w = img_size[0] / W
    pred = jnp.transpose(inp.reshape(B, A, attrs, H, W), (0, 1, 3, 4, 2))
    x = jax.nn.sigmoid(pred[..., 0])
    y = jax.nn.sigmoid(pred[..., 1])
    w = pred[..., 2]
    h = pred[..., 3]
    conf = jax.nn.sigmoid(pred[..., 4])
    cls = jax.nn.sigmoid(pred[..., 5:])
    gx = jnp.broadcast_to(jnp.arange(W, dtype=jnp.float32), (B, A, H, W))
    gy = jnp.broadcast_to(jnp.arange(H, dtype=jnp.float32)[:, None],
                          (B, A, H, W))
    sa = jnp.array([(aw / stride_w, ah / stride_h) for aw, ah in anchors],
                   jnp.float32)
    aw = sa[:, 0][None, :, None, None]
    ah = sa[:, 1][None, :, None, None]
    boxes = jnp.stack(
        [x + gx, y + gy, jnp.exp(w) * aw, jnp.exp(h) * ah], axis=-1)
    scale = jnp.array([stride_w, stride_h, stride_w, stride_h], jnp.float32)
    return jnp.concatenate([
        boxes.reshape(B, -1, 4) * scale,
        conf.reshape(B, -1, 1),
        cls.reshape(B, -1, num_classes),
    ], axis=-1)


if __name__ == "__main__":
    # Small, module-consistent shapes:
    #   3 anchors, 4 classes -> bbox_attrs = 9, channels = 27
    #   img_size = (64, 64), feature map 16x16 -> stride 4, H*W = 256 lanes
    anchors = [(12.0, 16.0), (19.0, 36.0), (40.0, 28.0)]
    num_classes = 4
    img_size = (64, 64)
    B, H, W = 2, 16, 16
    A = len(anchors)
    C = A * (5 + num_classes)

    key = jax.random.PRNGKey(0)
    x = jax.random.normal(key, (B, C, H, W), dtype=jnp.float32)

    out = decode_box(x, anchors, num_classes, img_size)
    out = jax.block_until_ready(out)

    ref = decode_box_ref(x, anchors, num_classes, img_size)
    assert out.shape == (B, A * H * W, 5 + num_classes), out.shape
    # Exact (tanh-based) sigmoid: tight tolerance again (no approximate vrcp).
    assert jnp.allclose(out, ref, atol=1e-4, rtol=1e-5), \
        float(jnp.max(jnp.abs(out - ref)))

    print("KERNEL_OK")
</pallas_src>

<mosaic_0001>
module attributes {stable_mosaic.version = 11 : i64} {
  func.func @_decode_kernel(%arg0: i32, %arg1: i32, %arg2: memref<1x27x256xf32, #tpu.memory_space<vmem>>, %arg3: memref<1x27x256xf32, #tpu.memory_space<vmem>>) attributes {dimension_semantics = [#tpu.dimension_semantics<parallel>, #tpu.dimension_semantics<parallel>], iteration_bounds = array<i64: 2, 1>, scalar_prefetch = 0 : i64, scratch_operands = 0 : i64, tpu.core_type = #tpu.core_type<tc>, window_params = [{transform_indices = @transform_0, window_bounds = array<i64: 1, 27, 256>}, {transform_indices = @transform_1, window_bounds = array<i64: 1, 27, 256>}]} {
    %0 = tpu.iota {dimensions = array<i32: 1>} : vector<1x256xi32>
    %c256_i32 = arith.constant 256 : i32
    %1 = arith.muli %arg1, %c256_i32 : i32
    %2 = vector.broadcast %1 : i32 to vector<1x256xi32>
    %3 = arith.addi %0, %2 : vector<1x256xi32>
    %c15_i32 = arith.constant 15 : i32
    %4 = vector.broadcast %c15_i32 : i32 to vector<1x256xi32>
    %5 = arith.andi %3, %4 : vector<1x256xi32>
    %c4_i32 = arith.constant 4 : i32
    %6 = vector.broadcast %c4_i32 : i32 to vector<1x256xi32>
    %7 = arith.shrsi %3, %6 : vector<1x256xi32>
    %8 = arith.sitofp %5 : vector<1x256xi32> to vector<1x256xf32>
    %cst = arith.constant 4.000000e+00 : f32
    %9 = vector.broadcast %cst : f32 to vector<1x256xf32>
    %10 = arith.mulf %8, %9 : vector<1x256xf32>
    %11 = arith.sitofp %7 : vector<1x256xi32> to vector<1x256xf32>
    %cst_0 = arith.constant 4.000000e+00 : f32
    %12 = vector.broadcast %cst_0 : f32 to vector<1x256xf32>
    %13 = arith.mulf %11, %12 : vector<1x256xf32>
    %14 = tpu.iota {dimensions = array<i32: 0>} : vector<27x1xi32>
    %c9_i32 = arith.constant 9 : i32
    %c0_i32 = arith.constant 0 : i32
    %15 = arith.cmpi eq, %c9_i32, %c0_i32 : i32
    %c1_i32 = arith.constant 1 : i32
    %16 = arith.select %15, %c1_i32, %c9_i32 : i32
    %17 = vector.broadcast %16 : i32 to vector<27x1xi32>
    %18 = arith.remsi %14, %17 : vector<27x1xi32>
    %c0_i32_1 = arith.constant 0 : i32
    %19 = vector.broadcast %c0_i32_1 : i32 to vector<27x1xi32>
    %20 = arith.cmpi ne, %18, %19 : vector<27x1xi32>
    %c0_i32_2 = arith.constant 0 : i32
    %21 = vector.broadcast %c0_i32_2 : i32 to vector<27x1xi32>
    %22 = arith.cmpi slt, %18, %21 : vector<27x1xi32>
    %c0_i32_3 = arith.constant 0 : i32
    %23 = arith.cmpi slt, %16, %c0_i32_3 : i32
    %24 = vector.broadcast %23 : i1 to vector<27x1xi1>
    %25 = vector.broadcast %24 : vector<27x1xi1> to vector<27x1xi1>
    %26 = arith.xori %22, %25 : vector<27x1xi1>
    %27 = arith.andi %26, %20 : vector<27x1xi1>
    %28 = vector.broadcast %16 : i32 to vector<27x1xi32>
    %29 = arith.addi %18, %28 : vector<27x1xi32>
    %30 = arith.select %27, %29, %18 : vector<27x1xi1>, vector<27x1xi32>
    %c0_i32_4 = arith.constant 0 : i32
    %31 = vector.broadcast %c0_i32_4 : i32 to vector<27x1xi32>
    %32 = arith.cmpi eq, %30, %31 : vector<27x1xi32>
    %c1_i32_5 = arith.constant 1 : i32
    %33 = vector.broadcast %c1_i32_5 : i32 to vector<27x1xi32>
    %34 = arith.cmpi eq, %30, %33 : vector<27x1xi32>
    %cst_6 = arith.constant 4.000000e+00 : f32
    %cst_7 = arith.constant 1.000000e+00 : f32
    %35 = vector.broadcast %cst_6 : f32 to vector<27x1xf32>
    %36 = vector.broadcast %cst_7 : f32 to vector<27x1xf32>
    %37 = arith.select %34, %35, %36 : vector<27x1xi1>, vector<27x1xf32>
    %cst_8 = arith.constant 4.000000e+00 : f32
    %38 = vector.broadcast %cst_8 : f32 to vector<27x1xf32>
    %39 = arith.select %32, %38, %37 : vector<27x1xi1>, vector<27x1xf32>
    %cst_9 = arith.constant 0.000000e+00 : f32
    %40 = vector.shape_cast %34 : vector<27x1xi1> to vector<27x1xi1>
    %41 = vector.broadcast %40 : vector<27x1xi1> to vector<27x256xi1>
    %42 = vector.shape_cast %13 : vector<1x256xf32> to vector<1x256xf32>
    %43 = vector.broadcast %42 : vector<1x256xf32> to vector<27x256xf32>
    %44 = vector.broadcast %cst_9 : f32 to vector<27x256xf32>
    %45 = arith.select %41, %43, %44 : vector<27x256xi1>, vector<27x256xf32>
    %46 = vector.shape_cast %32 : vector<27x1xi1> to vector<27x1xi1>
    %47 = vector.broadcast %46 : vector<27x1xi1> to vector<27x256xi1>
    %48 = vector.shape_cast %10 : vector<1x256xf32> to vector<1x256xf32>
    %49 = vector.broadcast %48 : vector<1x256xf32> to vector<27x256xf32>
    %50 = arith.select %47, %49, %45 : vector<27x256xi1>, vector<27x256xf32>
    %c0 = arith.constant 0 : index
    %c0_10 = arith.constant 0 : index
    %c0_11 = arith.constant 0 : index
    %51 = vector.load %arg2[%c0, %c0_10, %c0_11] : memref<1x27x256xf32, #tpu.memory_space<vmem>>, vector<1x27x256xf32>
    %52 = vector.shape_cast %51 : vector<1x27x256xf32> to vector<27x256xf32>
    %cst_12 = arith.constant 5.000000e-01 : f32
    %53 = vector.broadcast %cst_12 : f32 to vector<27x256xf32>
    %54 = arith.mulf %53, %52 : vector<27x256xf32>
    %55 = math.tanh %54 : vector<27x256xf32>
    %cst_13 = arith.constant 5.000000e-01 : f32
    %56 = vector.broadcast %cst_13 : f32 to vector<27x256xf32>
    %57 = arith.mulf %56, %55 : vector<27x256xf32>
    %cst_14 = arith.constant 5.000000e-01 : f32
    %58 = vector.broadcast %cst_14 : f32 to vector<27x256xf32>
    %59 = arith.addf %57, %58 : vector<27x256xf32>
    %60 = vector.broadcast %39 : vector<27x1xf32> to vector<27x256xf32>
    %61 = arith.mulf %59, %60 : vector<27x256xf32>
    %62 = arith.addf %61, %50 : vector<27x256xf32>
    %c0_15 = arith.constant 0 : index
    %c0_16 = arith.constant 0 : index
    %c0_17 = arith.constant 0 : index
    %63 = vector.load %arg3[%c0_15, %c0_16, %c0_17] : memref<1x27x256xf32, #tpu.memory_space<vmem>>, vector<1x27x256xf32>
    %64 = vector.shape_cast %63 : vector<1x27x256xf32> to vector<27x256xf32>
    %65 = vector.shape_cast %62 : vector<27x256xf32> to vector<1x27x256xf32>
    tpu.vector_store %arg3[%c0_15, %c0_16, %c0_17], %65 {strides = array<i32>} : memref<1x27x256xf32, #tpu.memory_space<vmem>>, vector<1x27x256xf32>,
    %66 = tpu.iota {dimensions = array<i32: 0>} : vector<2x1xi32>
    %c0_i32_18 = arith.constant 0 : i32
    %67 = vector.broadcast %c0_i32_18 : i32 to vector<2x1xi32>
    %68 = arith.cmpi eq, %66, %67 : vector<2x1xi32>
    %cst_19 = arith.constant 1.200000e+01 : f32
    %cst_20 = arith.constant 1.600000e+01 : f32
    %69 = vector.broadcast %cst_19 : f32 to vector<2x1xf32>
    %70 = vector.broadcast %cst_20 : f32 to vector<2x1xf32>
    %71 = arith.select %68, %69, %70 : vector<2x1xi1>, vector<2x1xf32>
    %c0_21 = arith.constant 0 : index
    %c2 = arith.constant 2 : index
    %c0_22 = arith.constant 0 : index
    %72 = vector.load %arg2[%c0_21, %c2, %c0_22] : memref<1x27x256xf32, #tpu.memory_space<vmem>>, vector<1x2x256xf32>
    %73 = vector.shape_cast %72 : vector<1x2x256xf32> to vector<2x256xf32>
    %74 = math.exp %73 : vector<2x256xf32>
    %75 = vector.broadcast %71 : vector<2x1xf32> to vector<2x256xf32>
    %76 = arith.mulf %74, %75 : vector<2x256xf32>
    %c0_23 = arith.constant 0 : index
    %c2_24 = arith.constant 2 : index
    %c0_25 = arith.constant 0 : index
    %77 = vector.load %arg3[%c0_23, %c2_24, %c0_25] : memref<1x27x256xf32, #tpu.memory_space<vmem>>, vector<1x2x256xf32>
    %78 = vector.shape_cast %77 : vector<1x2x256xf32> to vector<2x256xf32>
    %79 = vector.shape_cast %76 : vector<2x256xf32> to vector<1x2x256xf32>
    tpu.vector_store %arg3[%c0_23, %c2_24, %c0_25], %79 {strides = array<i32>} : memref<1x27x256xf32, #tpu.memory_space<vmem>>, vector<1x2x256xf32>,
    %c0_i32_26 = arith.constant 0 : i32
    %80 = vector.broadcast %c0_i32_26 : i32 to vector<2x1xi32>
    %81 = arith.cmpi eq, %66, %80 : vector<2x1xi32>
    %cst_27 = arith.constant 1.900000e+01 : f32
    %cst_28 = arith.constant 3.600000e+01 : f32
    %82 = vector.broadcast %cst_27 : f32 to vector<2x1xf32>
    %83 = vector.broadcast %cst_28 : f32 to vector<2x1xf32>
    %84 = arith.select %81, %82, %83 : vector<2x1xi1>, vector<2x1xf32>
    %c0_29 = arith.constant 0 : index
    %c11 = arith.constant 11 : index
    %c0_30 = arith.constant 0 : index
    %85 = vector.load %arg2[%c0_29, %c11, %c0_30] : memref<1x27x256xf32, #tpu.memory_space<vmem>>, vector<1x2x256xf32>
    %86 = vector.shape_cast %85 : vector<1x2x256xf32> to vector<2x256xf32>
    %87 = math.exp %86 : vector<2x256xf32>
    %88 = vector.broadcast %84 : vector<2x1xf32> to vector<2x256xf32>
    %89 = arith.mulf %87, %88 : vector<2x256xf32>
    %c0_31 = arith.constant 0 : index
    %c11_32 = arith.constant 11 : index
    %c0_33 = arith.constant 0 : index
    %90 = vector.load %arg3[%c0_31, %c11_32, %c0_33] : memref<1x27x256xf32, #tpu.memory_space<vmem>>, vector<1x2x256xf32>
    %91 = vector.shape_cast %90 : vector<1x2x256xf32> to vector<2x256xf32>
    %92 = vector.shape_cast %89 : vector<2x256xf32> to vector<1x2x256xf32>
    tpu.vector_store %arg3[%c0_31, %c11_32, %c0_33], %92 {strides = array<i32>} : memref<1x27x256xf32, #tpu.memory_space<vmem>>, vector<1x2x256xf32>,
    %c0_i32_34 = arith.constant 0 : i32
    %93 = vector.broadcast %c0_i32_34 : i32 to vector<2x1xi32>
    %94 = arith.cmpi eq, %66, %93 : vector<2x1xi32>
    %cst_35 = arith.constant 4.000000e+01 : f32
    %cst_36 = arith.constant 2.800000e+01 : f32
    %95 = vector.broadcast %cst_35 : f32 to vector<2x1xf32>
    %96 = vector.broadcast %cst_36 : f32 to vector<2x1xf32>
    %97 = arith.select %94, %95, %96 : vector<2x1xi1>, vector<2x1xf32>
    %c0_37 = arith.constant 0 : index
    %c20 = arith.constant 20 : index
    %c0_38 = arith.constant 0 : index
    %98 = vector.load %arg2[%c0_37, %c20, %c0_38] : memref<1x27x256xf32, #tpu.memory_space<vmem>>, vector<1x2x256xf32>
    %99 = vector.shape_cast %98 : vector<1x2x256xf32> to vector<2x256xf32>
    %100 = math.exp %99 : vector<2x256xf32>
    %101 = vector.broadcast %97 : vector<2x1xf32> to vector<2x256xf32>
    %102 = arith.mulf %100, %101 : vector<2x256xf32>
    %c0_39 = arith.constant 0 : index
    %c20_40 = arith.constant 20 : index
    %c0_41 = arith.constant 0 : index
    %103 = vector.load %arg3[%c0_39, %c20_40, %c0_41] : memref<1x27x256xf32, #tpu.memory_space<vmem>>, vector<1x2x256xf32>
    %104 = vector.shape_cast %103 : vector<1x2x256xf32> to vector<2x256xf32>
    %105 = vector.shape_cast %102 : vector<2x256xf32> to vector<1x2x256xf32>
    tpu.vector_store %arg3[%c0_39, %c20_40, %c0_41], %105 {strides = array<i32>} : memref<1x27x256xf32, #tpu.memory_space<vmem>>, vector<1x2x256xf32>,
    return
  }
  func.func @transform_0(%arg0: i32, %arg1: i32) -> (i32, i32, i32) {
    %c0_i32 = arith.constant 0 : i32
    %c0_i32_0 = arith.constant 0 : i32
    return %arg0, %c0_i32, %arg1 : i32, i32, i32
  }
  func.func @transform_1(%arg0: i32, %arg1: i32) -> (i32, i32, i32) {
    %c0_i32 = arith.constant 0 : i32
    %c0_i32_0 = arith.constant 0 : i32
    return %arg0, %c0_i32, %arg1 : i32, i32, i32
  }
}

</mosaic_0001>

<bundles_post_ra>
// kernel: tpu_custom_call.1
= control target key start
LH: loop header
LB: loop body
LE: loop exit
PB: predicated region body
PF: predicated region fallthrough
CT: control target
= control target key end

     0   :  { %s601_s6 = smov 0   ;;  %s603_s7 = smov 0   ;;  %s750_s0 = inlined_call_operand.vmem [shape: f32[2,27,256], index: 0, kind: input, shape index: {}]   ;;  %s751_s1 = inlined_call_operand.vmem [shape: f32[2,27,256], index: 1, kind: output, shape index: {}]  }
   0x1   :  { %s605_s8 = smov 0  }
   0x2 LB: > { %s23_s9 = sadd.s32 1, %s581_s7  ;;  %p490_p0 = scmp.ge.s32.totalorder %s585_s8, 1  ;;  %s585_s8 = sphi %s605_s8, %s11_s8   ;;  %s581_s7 = sphi %s603_s7, %s753_s7   ;;  %s577_s6 = sphi %s601_s6, %s752_s6  }
   0x3   : > { %p25_p1 = scmp.ge.s32.totalorder %s23_s9, 2  ;;  %p108_p2 = scmp.lt.s32.totalorder %s585_s8, 3 }
   0x5   : > { %s755_s9 = smov (%p25_p1, %s23_s9), 0  ;;  %p109_p3 = pnand %p490_p0, %p108_p2 }
   0x6   : > { %p137_p4 = scmp.lt.s32.totalorder (!%p109_p3), %s577_s6, 1  ;;  %v156_v0 = vlaneseq (!%p109_p3)  ;;  %v587_v49 = vmov (!%p109_p3), 16.0   ;;  %v588_v56 = vmov (!%p109_p3), 1.0  }
   0x7   : > { %112 = sbr.rel (%p109_p3) target bundleno = 62 (0x3e), region = 24 }
   0x8   : > { %v157_v1 = vand.u32 (!%p109_p3), 127, %v156_v0  ;;  %v621_v2 = vshrl.u32 (!%p109_p3), %v156_v0, 7 }
   0xa   : > { %v163_v3 = vand.u32 (!%p109_p3), 15, %v157_v1  ;;  %v165_v4 = vshra.s32 (!%p109_p3), %v157_v1, 4  ;;  %v625_v5 = vmul.u32.u64.low (!%p109_p3), 3817748708, %v621_v2  ;;  %v626_v6 = vmul.u32.u64.high 3817748708, %v621_v2, %v625_v5 }
   0xb   : > { %v158_v7 = vadd.s32 (!%p109_p3), 128, %v157_v1  ;;  %v636_v8 = vadd.s32 (!%p109_p3), 8, %v621_v2  ;;  %v639_v9 = vadd.s32 (!%p109_p3), 16, %v621_v2  ;;  %v645_v15 = vadd.s32 (!%p109_p3), 24, %v621_v2 }
   0xc   : > { %v167_v10 = vcvt.s32.f32 (!%p109_p3), %v163_v3  ;;  %v171_v11 = vcvt.s32.f32 (!%p109_p3), %v165_v4  ;;  %vm356_vm0 = vcmp.eq.s32.totalorder (!%p109_p3), %v621_v2, 0  ;;  %v186_v23 = vshrl.u32 (!%p109_p3), %v626_v6, 3 }
   0xd   : > { %v164_v17 = vand.u32 (!%p109_p3), 15, %v158_v7  ;;  %v166_v18 = vshra.s32 (!%p109_p3), %v158_v7, 4  ;;  %v656_v30 = vmul.u32.u64.low (!%p109_p3), 3817748708, %v636_v8  ;;  %v657_v31 = vmul.u32.u64.high 3817748708, %v636_v8, %v656_v30 }
   0xe   : > { %s757_s6 = smov (!%p137_p4, %s577_s6), 1  ;;  %v649_v21 = vmul.f32 4.0, %v167_v10  ;;  %v651_v22 = vmul.f32 4.0, %v171_v11  ;;  %v187_v29 = vmul.u32 9, %v186_v23  ;;  %v679_v50 = vsel %vm356_vm0, 12.0, %v587_v49 }
   0xf   : > { %s497_s10 = sshll.u32 %s757_s6, 6  ;;  %v168_v26 = vcvt.s32.f32 %v164_v17  ;;  %v172_v27 = vcvt.s32.f32 %v166_v18  ;;  %v666_v37 = vmul.u32.u64.low 3817748708, %v639_v9  ;;  %v667_v38 = vmul.u32.u64.high 3817748708, %v639_v9, %v666_v37 }
  0x10   : > { %s633_s13 = scalar_lea.vmem %s750_s0, %s497_s10  ;;  %v188_v36 = vsub.s32 %v621_v2, %v187_v29  ;;  %v672_v42 = vmul.u32.u64.low 3817748708, %v645_v15  ;;  %v673_v43 = vmul.u32.u64.high 3817748708, %v645_v15, %v672_v42  ;;  %v197_v46 = vshrl.u32 %v657_v31, 3  ;;  %s697_s16 = scalar_lea.vmem %s751_s1, %s497_s10 }
  0x11   : > { %v292_v12 = vld [vmem:[%s633_s13] sm:$0xff]  ;;  %v293_v13 = vld [vmem:[%s633_s13 + $0x8] sm:$0xff]  ;;  %v294_v14 = vld [vmem:[%s633_s13 + $0x10] sm:$0xff]  ;;  %v660_v33 = vmul.f32 4.0, %v168_v26  ;;  %v662_v34 = vmul.f32 4.0, %v172_v27  ;;  %v208_v53 = vshrl.u32 %v667_v38, 3 }
  0x12   : > { %v300_v16 = vmul.f32 0.5, %v292_v12  ;;  %v301_v19 = vmul.f32 0.5, %v293_v13  ;;  %v295_v20 = vld [vmem:[%s633_s13 + $0x18] sm:$0xff]  ;;  %v302_v24 = vmul.f32 0.5, %v294_v14  ;;  %v296_v25 = vld [vmem:[%s633_s13 + $0x20] sm:$0xff]  ;;  %v297_v32 = vld [vmem:[%s633_s13 + $0x28] sm:$0xff] }
  0x13   : > { %v303_v28 = vmul.f32 0.5, %v295_v20  ;;  %v304_v35 = vmul.f32 0.5, %v296_v25  ;;  %v298_v39 = vld [vmem:[%s633_s13 + $0x30] sm:$0x7]  ;;  %v299_v40 = vld [vmem:[%s633_s13 + $0x38] sm:$0x7] }
  0x14   : > { %535 = vtanh.f32 %v300_v16  ;;  %v305_v41 = vmul.f32 0.5, %v297_v32  ;;  %v358_v44 = vld [vmem:[%s633_s13] sm:$0xc]  ;;  %vm224_vm1 = vcmp.ne.s32.totalorder %v188_v36, 0  ;;  %vm228_vm2 = vcmp.lt.s32.totalorder %v188_v36, 0 }
  0x15   : > { %537 = vtanh.f32 %v301_v19  ;;  %v236_v45 = vadd.s32 9, %v188_v36  ;;  %vm232_vm3 = vmand %vm228_vm2, %vm224_vm1  ;;  %v306_v47 = vmul.f32 0.5, %v298_v39  ;;  %v307_v48 = vmul.f32 0.5, %v299_v40 }
  0x16   : > { %539 = vtanh.f32 %v302_v24  ;;  %v198_v52 = vmul.u32 9, %v197_v46  ;;  %v360_v54 = vmul.f32 1.442695, %v358_v44  ;;  %v219_v55 = vshrl.u32 %v673_v43, 3 }
  0x17   : > { %541 = vtanh.f32 %v303_v28  ;;  %v240_v51 = vsel %vm232_vm3, %v236_v45, %v188_v36  ;;  %v209_v1 = vmul.u32 9, %v208_v53  ;;  %v365_v45 = vrot.slane %v679_v50, 6 }
  0x18   : > { %543 = vtanh.f32 %v304_v35  ;;  %vm244_vm4 = vcmp.eq.s32.totalorder %v240_v51, 0  ;;  %vm248_vm5 = vcmp.eq.s32.totalorder %v240_v51, 1  ;;  %v199_v60 = vsub.s32 %v636_v8, %v198_v52 }
  0x19   : > { %545 = vtanh.f32 %v305_v41  ;;  %v252_v57 = vsel %vm248_vm5, 4.0, %v588_v56  ;;  %v268_v58 = vsel %vm248_vm5, %v651_v22, 0.0  ;;  %v269_v59 = vsel %vm248_vm5, %v662_v34, 0.0 }
  0x1a   : > { %547 = vtanh.f32 %v306_v47  ;;  %v256_v62 = vsel %vm244_vm4, 4.0, %v252_v57  ;;  %v284_v63 = vsel %vm244_vm4, %v649_v21, %v268_v58  ;;  %v285_v0 = vsel %vm244_vm4, %v660_v33, %v269_v59 }
  0x1b   : > { %vm225_vm6 = vcmp.ne.s32.totalorder %v199_v60, 0  ;;  %vm229_vm7 = vcmp.lt.s32.totalorder %v199_v60, 0  ;;  %v237_v5 = vadd.s32 9, %v199_v60  ;;  %v210_v10 = vsub.s32 %v639_v9, %v209_v1  ;;  %v372_v1 = vld [vmem:[%s633_s13 + $0x10] sm:$0x18] }
  0x1c   : > { %vm233_vm8 = vmand %vm229_vm7, %vm225_vm6  ;;  %v220_v11 = vmul.u32 9, %v219_v55  ;;  %549 = vtanh.f32 %v307_v48 }
  0x1d   : > { %v241_v13 = vsel %vm233_vm8, %v237_v5, %v199_v60  ;;  %551 = vpow2.f32 %v360_v54  ;;  %vm226_vm11 = vcmp.ne.s32.totalorder %v210_v10, 0  ;;  %vm230_vm12 = vcmp.lt.s32.totalorder %v210_v10, 0  ;;  %v359_v54 = vld [vmem:[%s633_s13 + $0x8] sm:$0xc] }
  0x1e   : > { %v536_v61 = vpop.eup %535  ;;  %vm245_vm9 = vcmp.eq.s32.totalorder %v241_v13, 0  ;;  %vm249_vm10 = vcmp.eq.s32.totalorder %v241_v13, 1  ;;  %v238_v37 = vadd.s32 9, %v210_v10  ;;  %vm234_vm13 = vmand %vm230_vm12, %vm226_vm11  ;;  %v221_v43 = vsub.s32 %v645_v15, %v220_v11 }
  0x1f   : > { %v538_v3 = vpop.eup %537  ;;  %v316_v4 = vmul.f32 0.5, %v536_v61  ;;  %v253_v20 = vsel %vm249_vm10, 4.0, %v588_v56  ;;  %v270_v23 = vsel %vm249_vm10, %v651_v22, 0.0  ;;  %v271_v28 = vsel %vm249_vm10, %v662_v34, 0.0 }
  0x20   : > { %v540_v6 = vpop.eup %539  ;;  %v317_v7 = vmul.f32 0.5, %v538_v3  ;;  %v257_v26 = vsel %vm245_vm9, 4.0, %v253_v20  ;;  %v286_v27 = vsel %vm245_vm9, %v649_v21, %v270_v23  ;;  %v287_v31 = vsel %vm245_vm9, %v660_v33, %v271_v28 }
  0x21   : > { %v542_v8 = vpop.eup %541  ;;  %v324_v12 = vadd.f32 0.5, %v316_v4  ;;  %v318_v14 = vmul.f32 0.5, %v540_v6  ;;  %v242_v42 = vsel %vm234_vm13, %v238_v37, %v210_v10  ;;  %vm227_vm1 = vcmp.ne.s32.totalorder %v221_v43, 0  ;;  %v386_v10 = vld [vmem:[%s633_s13 + $0x20] sm:$0x30] }
  0x22   : > { %v544_v16 = vpop.eup %543  ;;  %v325_v17 = vadd.f32 0.5, %v317_v7  ;;  %v319_v18 = vmul.f32 0.5, %v542_v8  ;;  %vm246_vm14 = vcmp.eq.s32.totalorder %v242_v42, 0  ;;  %vm250_vm15 = vcmp.eq.s32.totalorder %v242_v42, 1  ;;  %v373_v7 = vld [vmem:[%s633_s13 + $0x18] sm:$0x18] }
  0x23   : > { %v332_v19 = vmul.f32 %v324_v12, %v256_v62  ;;  %v326_v24 = vadd.f32 0.5, %v318_v14  ;;  %v546_v9 = vpop.eup %545  ;;  %v320_v40 = vmul.f32 0.5, %v544_v16  ;;  %v254_v49 = vsel %vm250_vm15, 4.0, %v588_v56  ;;  %v387_v8 = vld [vmem:[%s633_s13 + $0x28] sm:$0x30] }
  0x24   : > { %v333_v25 = vmul.f32 %v325_v17, %v256_v62  ;;  %v327_v32 = vadd.f32 0.5, %v319_v18  ;;  %v548_v35 = vpop.eup %547  ;;  %v321_v41 = vmul.f32 0.5, %v546_v9  ;;  %v272_v51 = vsel %vm250_vm15, %v651_v22, 0.0 }
  0x25   : > { %v340_v29 = vadd.f32 %v332_v19, %v284_v63  ;;  %v334_v30 = vmul.f32 %v326_v24, %v257_v26  ;;  %v322_v44 = vmul.f32 0.5, %v548_v35  ;;  %v328_v47 = vadd.f32 0.5, %v320_v40 }
  0x26   : > { %v341_v36 = vadd.f32 %v333_v25, %v285_v0  ;;  %v335_v39 = vmul.f32 %v327_v32, %v257_v26  ;;  %v550_v48 = vpop.eup %549  ;;  %v273_v52 = vsel %vm250_vm15, %v662_v34, 0.0  ;;  %v329_v53 = vadd.f32 0.5, %v321_v41 }
  0x27   : > { %348 = vst [vmem:[%s697_s16] sm:$0xff] %v340_v29  ;;  %v342_v38 = vadd.f32 %v334_v30, %v286_v27  ;;  %v552_v55 = vpop.eup %551  ;;  %v258_v15 = vsel %vm246_vm14, 4.0, %v254_v49  ;;  %v288_v57 = vsel %vm246_vm14, %v649_v21, %v272_v51  ;;  %v289_v58 = vsel %vm246_vm14, %v660_v33, %v273_v52 }
  0x28   : > { %349 = vst [vmem:[%s697_s16 + $0x8] sm:$0xff] %v341_v36  ;;  %v343_v46 = vadd.f32 %v335_v39, %v287_v31  ;;  %v336_v59 = vmul.f32 %v328_v47, %v258_v15  ;;  %v337_v60 = vmul.f32 %v329_v53, %v258_v15  ;;  %vm231_vm2 = vcmp.lt.s32.totalorder %v221_v43, 0 }
  0x29   : > { %350 = vst [vmem:[%s697_s16 + $0x10] sm:$0xff] %v342_v38  ;;  %v239_v61 = vadd.s32 9, %v221_v43  ;;  %vm235_vm3 = vmand %vm231_vm2, %vm227_vm1  ;;  %v323_v62 = vmul.f32 0.5, %v550_v48  ;;  %v367_v63 = vmul.f32 %v552_v55, %v365_v45  ;;  %v362_v0 = vmul.f32 1.442695, %v359_v54 }
  0x2a   : > { %351 = vst [vmem:[%s697_s16 + $0x18] sm:$0xff] %v343_v46  ;;  %v344_v3 = vadd.f32 %v336_v59, %v288_v57  ;;  %v345_v4 = vadd.f32 %v337_v60, %v289_v58  ;;  %v330_v6 = vadd.f32 0.5, %v322_v44  ;;  %v374_v16 = vmul.f32 1.442695, %v372_v1 }
  0x2b   : > { %v243_v5 = vsel %vm235_vm3, %v239_v61, %v221_v43  ;;  %v331_v11 = vadd.f32 0.5, %v323_v62  ;;  %369 = vst [vmem:[%s697_s16] sm:$0xc] %v367_v63  ;;  %553 = vpow2.f32 %v362_v0  ;;  %v376_v24 = vmul.f32 1.442695, %v373_v7 }
  0x2c   : > { %vm247_vm4 = vcmp.eq.s32.totalorder %v243_v5, 0  ;;  %vm251_vm5 = vcmp.eq.s32.totalorder %v243_v5, 1  ;;  %352 = vst [vmem:[%s697_s16 + $0x20] sm:$0xff] %v344_v3  ;;  %353 = vst [vmem:[%s697_s16 + $0x28] sm:$0xff] %v345_v4  ;;  %555 = vpow2.f32 %v374_v16  ;;  %v388_v9 = vmul.f32 1.442695, %v386_v10 }
  0x2d   : > { %v255_v12 = vsel %vm251_vm5, 4.0, %v588_v56  ;;  %v274_v13 = vsel %vm251_vm5, %v651_v22, 0.0  ;;  %v275_v14 = vsel %vm251_vm5, %v662_v34, 0.0  ;;  %v390_v25 = vmul.f32 1.442695, %v387_v8 }
  0x2e   : > { %v259_v17 = vsel %vm247_vm4, 4.0, %v255_v12  ;;  %v290_v18 = vsel %vm247_vm4, %v649_v21, %v274_v13  ;;  %v291_v19 = vsel %vm247_vm4, %v660_v33, %v275_v14  ;;  %557 = vpow2.f32 %v376_v24 }
  0x2f   : > { %v338_v20 = vmul.f32 %v330_v6, %v259_v17  ;;  %v339_v23 = vmul.f32 %v331_v11, %v259_v17  ;;  %559 = vpow2.f32 %v388_v9  ;;  %v589_v22 = vmov 36.0  }
  0x30   : > { %v371_v21 = vsel %vm356_vm0, 19.0, %v589_v22  ;;  %561 = vpow2.f32 %v390_v25  ;;  %v590_v27 = vmov 28.0  }
  0x31   : > { %v346_v56 = vadd.f32 %v338_v20, %v290_v18  ;;  %v347_v26 = vadd.f32 %v339_v23, %v291_v19  ;;  %v379_v34 = vrot.slane %v371_v21, 5  ;;  %v385_v28 = vsel %vm356_vm0, 40.0, %v590_v27 }
  0x32   : > { %v393_v31 = vrot.slane %v385_v28, 4 }
  0x33   : > { %354 = vst [vmem:[%s697_s16 + $0x30] sm:$0x7] %v346_v56  ;;  %355 = vst [vmem:[%s697_s16 + $0x38] sm:$0x7] %v347_v26 }
  0x35   : > { %v554_v33 = vpop.eup %553 }
  0x36   : > { %v368_v29 = vmul.f32 %v554_v33, %v365_v45  ;;  %v556_v30 = vpop.eup %555 }
  0x37   : > { %v381_v32 = vmul.f32 %v556_v30, %v379_v34 }
  0x38   : > { %370 = vst [vmem:[%s697_s16 + $0x8] sm:$0xc] %v368_v29  ;;  %v558_v35 = vpop.eup %557 }
  0x39   : > { %v560_v36 = vpop.eup %559  ;;  %383 = vst [vmem:[%s697_s16 + $0x10] sm:$0x18] %v381_v32  ;;  %v382_v37 = vmul.f32 %v558_v35, %v379_v34 }
  0x3a   : > { %v562_v38 = vpop.eup %561  ;;  %v395_v39 = vmul.f32 %v560_v36, %v393_v31 }
  0x3b   : > { %384 = vst [vmem:[%s697_s16 + $0x18] sm:$0x18] %v382_v37  ;;  %v396_v40 = vmul.f32 %v562_v38, %v393_v31 }
  0x3c   : > { %397 = vst [vmem:[%s697_s16 + $0x20] sm:$0x30] %v395_v39 }
  0x3d   : > { %398 = vst [vmem:[%s697_s16 + $0x28] sm:$0x30] %v396_v40 }
  0x3e PF: > { %s11_s8 = sadd.s32 1, %s585_s8   ;;  %s752_s6 = smov %s581_s7 }
  0x3f   : > { %p8_p5 = scmp.ge.s32.totalorder %s11_s8, 4   ;;  %s753_s7 = smov %s755_s9 }
  0x41   :  { %10 = sbr.rel (!%p8_p5) target bundleno = 2 (0x2), region = 54 }

</bundles_post_ra>
